<compile_context>
chip_gen: v6e
topology: v6e:2x2x1
jax: 0.10.0
libtpu: 0.0.40
codegen_flags: <defaults>
</compile_context>

<pallas_src>
import jax
import jax.numpy as jnp
from jax import lax
from jax.experimental import pallas as pl
from jax.experimental.pallas import tpu as pltpu


# ----------------------------- Pallas kernel --------------------------------
def _conv_bn_relu_kernel(x_ref, w_ref, shift_ref, o_ref):
    # x_ref:     (K, tp)  pixel columns, lane-dense
    # w_ref:     (N, K)   conv weight with BN scale folded in (VMEM-resident)
    # shift_ref: (N, 1)   BN shift (beta - mean*scale)        (VMEM-resident)
    # o_ref:     (N, tp)
    y = jnp.dot(w_ref[...], x_ref[...], preferred_element_type=jnp.float32)
    y = y + shift_ref[...]
    o_ref[...] = jnp.maximum(y, 0.0).astype(o_ref.dtype)


def _pick_tile(p, k, n, *, target_bytes=2 * 1024 * 1024, max_tile=8192):
    """Pixel-tile width: lane-aligned multiple of 128, sized to amortize per-step overhead."""
    bytes_per_col = 4 * (k + n)                         # f32 in + out per pixel column
    tp = min(max_tile, max(128, target_bytes // bytes_per_col))
    tp = max(128, (tp // 128) * 128)                    # lane-aligned
    p128 = ((p + 127) // 128) * 128                     # don't exceed rounded-up P
    return min(tp, p128)


def conv1x1_bn_relu(x_bkp, w_nk, shift_n, *, target_bytes=2 * 1024 * 1024, max_tile=8192):
    """x_bkp: (B, K, P) f32; w_nk: (N, K) f32 (BN scale folded); shift_n: (N,) f32
    -> (B, N, P) f32 = relu(w @ x + shift)."""
    B, K, P = x_bkp.shape
    N = w_nk.shape[0]
    tp = _pick_tile(P, K, N, target_bytes=target_bytes, max_tile=max_tile)
    n_blocks = pl.cdiv(P, tp)                           # ragged tail handled by Pallas clipping
    shift_n1 = shift_n.reshape(N, 1)

    cost = pl.CostEstimate(
        flops=2 * B * P * K * N,
        transcendentals=0,
        bytes_accessed=4 * (B * K * P + K * N + N + B * N * P),
    )

    return pl.pallas_call(
        _conv_bn_relu_kernel,
        out_shape=jax.ShapeDtypeStruct((B, N, P), jnp.float32),
        grid_spec=pltpu.PrefetchScalarGridSpec(
            num_scalar_prefetch=0,
            grid=(B, n_blocks),
            in_specs=[
                pl.BlockSpec((None, K, tp), lambda b, j: (b, 0, j)),  # X tile (K, tp)
                pl.BlockSpec((N, K), lambda b, j: (0, 0)),            # weight, resident
                pl.BlockSpec((N, 1), lambda b, j: (0, 0)),            # shift, resident
            ],
            out_specs=pl.BlockSpec((None, N, tp), lambda b, j: (b, 0, j)),
        ),
        compiler_params=pltpu.CompilerParams(
            dimension_semantics=("parallel", "parallel"),
            vmem_limit_bytes=32 * 1024 * 1024,
        ),
        cost_estimate=cost,
    )(x_bkp, w_nk, shift_n1)


# --------------------------- FourierUnit forward -----------------------------
def fourier_unit_forward(x, conv_w, bn_gamma, bn_beta, bn_mean, bn_var, eps=1e-5):
    """x: (B, C, H, W) f32 NCHW. conv_w: (2*Cout, 2*C) f32 (1x1 conv weight, squeezed)."""
    B, C, H, W = x.shape
    K = 2 * C
    N = conv_w.shape[0]            # 2 * Cout
    Cout = N // 2

    # rfft2 over (H, W), orthonormal (== torch.rfft(signal_ndim=2, normalized=True))
    ffted = jnp.fft.rfft2(x.astype(jnp.float32), axes=(-2, -1), norm="ortho")
    Wr = ffted.shape[-1]           # W // 2 + 1
    P = H * Wr

    # De-interleaved channel layout [re_0..re_{C-1}, im_0..im_{C-1}] built directly as
    # (B, 2C, H*Wr): pixels are already lane-dense, no NCHW<->NHWC transpose, no padding.
    x_real = jnp.real(ffted).reshape(B, C, P)
    x_imag = jnp.imag(ffted).reshape(B, C, P)
    x_kp = jnp.concatenate([x_real, x_imag], axis=1)      # (B, 2C, P)

    # Permute the conv weight once to match: input columns interleaved -> de-interleaved,
    # output rows de-interleaved (all reals first, then all imags) so the complex re-pack
    # after the kernel is a plain slice.
    in_perm = jnp.concatenate([jnp.arange(0, K, 2), jnp.arange(1, K, 2)])
    out_perm = jnp.concatenate([jnp.arange(0, N, 2), jnp.arange(1, N, 2)])
    w_perm = conv_w[out_perm][:, in_perm]                 # (N, K)

    # Fold BatchNorm (inference) into the weight (scale) and a per-channel shift.
    inv_std = 1.0 / jnp.sqrt(bn_var + eps)
    scale = (bn_gamma * inv_std)[out_perm]                # (N,)
    shift = (bn_beta - bn_mean * bn_gamma * inv_std)[out_perm]  # (N,)
    w_eff = w_perm * scale[:, None]

    y = conv1x1_bn_relu(x_kp, w_eff, shift)               # (B, N, P)

    # Re-pack to complex (reals in rows [:Cout], imags in rows [Cout:]) and invert.
    y_re = y[:, :Cout].reshape(B, Cout, H, Wr)
    y_im = y[:, Cout:].reshape(B, Cout, H, Wr)
    y_complex = lax.complex(y_re, y_im)                   # (B, Cout, H, Wr)

    # irfft2 orthonormal with explicit output size (== torch.irfft normalized=True)
    out = jnp.fft.irfft2(y_complex, s=(H, W), axes=(-2, -1), norm="ortho")
    return out.astype(jnp.float32)


# Pure-JAX reference (no Pallas, PyTorch channel ordering) for a silent self-check.
def _reference_forward(x, conv_w, bn_gamma, bn_beta, bn_mean, bn_var, eps=1e-5):
    B, C, H, W = x.shape
    Cout = conv_w.shape[0] // 2
    ffted = jnp.fft.rfft2(x.astype(jnp.float32), axes=(-2, -1), norm="ortho")
    Wr = ffted.shape[-1]
    ri = jnp.stack([jnp.real(ffted), jnp.imag(ffted)], axis=2).reshape(B, 2 * C, H, Wr)
    conv = jnp.einsum("oc,bchw->bohw", conv_w, ri)
    inv_std = 1.0 / jnp.sqrt(bn_var + eps)
    bn = (conv - bn_mean[None, :, None, None]) * inv_std[None, :, None, None]
    bn = bn * bn_gamma[None, :, None, None] + bn_beta[None, :, None, None]
    act = jnp.maximum(bn, 0.0)
    y = act.reshape(B, Cout, 2, H, Wr)
    y_complex = y[:, :, 0] + 1j * y[:, :, 1]
    return jnp.fft.irfft2(y_complex, s=(H, W), axes=(-2, -1), norm="ortho")


if __name__ == "__main__":
    key = jax.random.PRNGKey(0)
    B, C, H, W = 2, 4, 16, 16
    Cout = 4  # out_channels

    k_x, k_w, k_g, k_b, k_m, k_v = jax.random.split(key, 6)
    x = jax.random.normal(k_x, (B, C, H, W), dtype=jnp.float32)

    # Conv2d(in=2C, out=2Cout, k=1, bias=False) weight -> (2Cout, 2C)
    conv_w = jax.random.normal(k_w, (2 * Cout, 2 * C), dtype=jnp.float32) * 0.1
    # BatchNorm2d(2Cout) parameters / running stats (deterministic init).
    bn_gamma = 1.0 + 0.1 * jax.random.normal(k_g, (2 * Cout,), dtype=jnp.float32)
    bn_beta = 0.1 * jax.random.normal(k_b, (2 * Cout,), dtype=jnp.float32)
    bn_mean = 0.05 * jax.random.normal(k_m, (2 * Cout,), dtype=jnp.float32)
    bn_var = 1.0 + 0.1 * jnp.abs(jax.random.normal(k_v, (2 * Cout,), dtype=jnp.float32))

    fwd = jax.jit(fourier_unit_forward)
    out = fwd(x, conv_w, bn_gamma, bn_beta, bn_mean, bn_var)
    out = jax.block_until_ready(out)

    ref = _reference_forward(x, conv_w, bn_gamma, bn_beta, bn_mean, bn_var)
    assert out.shape == (B, Cout, H, W)
    assert jnp.allclose(out, ref, atol=1e-4, rtol=1e-4)

    print("KERNEL_OK")
</pallas_src>

<mosaic_0001>
module attributes {stable_mosaic.version = 11 : i64} {
  func.func @_conv_bn_relu_kernel(%arg0: i32, %arg1: i32, %arg2: memref<1x8x256xf32, #tpu.memory_space<vmem>>, %arg3: memref<8x8xf32, #tpu.memory_space<vmem>>, %arg4: memref<8x1xf32, #tpu.memory_space<vmem>>, %arg5: memref<1x8x256xf32, #tpu.memory_space<vmem>>) attributes {dimension_semantics = [#tpu.dimension_semantics<parallel>, #tpu.dimension_semantics<parallel>], iteration_bounds = array<i64: 2, 1>, scalar_prefetch = 0 : i64, scratch_operands = 0 : i64, tpu.core_type = #tpu.core_type<tc>, window_params = [{transform_indices = @transform_0, window_bounds = array<i64: 1, 8, 256>}, {pipeline_mode = #tpu.pipeline_mode<synchronous>, transform_indices = @transform_1, window_bounds = array<i64: 8, 8>}, {pipeline_mode = #tpu.pipeline_mode<synchronous>, transform_indices = @transform_2, window_bounds = array<i64: 8, 1>}, {transform_indices = @transform_3, window_bounds = array<i64: 1, 8, 256>}]} {
    %c0 = arith.constant 0 : index
    %c0_0 = arith.constant 0 : index
    %0 = vector.load %arg3[%c0, %c0_0] : memref<8x8xf32, #tpu.memory_space<vmem>>, vector<8x8xf32>
    %c0_1 = arith.constant 0 : index
    %c0_2 = arith.constant 0 : index
    %c0_3 = arith.constant 0 : index
    %1 = vector.load %arg2[%c0_1, %c0_2, %c0_3] : memref<1x8x256xf32, #tpu.memory_space<vmem>>, vector<1x8x256xf32>
    %2 = vector.shape_cast %1 : vector<1x8x256xf32> to vector<8x256xf32>
    %cst = arith.constant dense<0.000000e+00> : vector<8x256xf32>
    %3 = tpu.matmul %0, %2, %cst {dimension_numbers = #tpu.dot_dimension_numbers<[1], [0], [0], [1], [0, 0, 1, 1], [], []>} : vector<8x8xf32>, vector<8x256xf32>, vector<8x256xf32> -> vector<8x256xf32>
    %c0_4 = arith.constant 0 : index
    %c0_5 = arith.constant 0 : index
    %4 = vector.load %arg4[%c0_4, %c0_5] : memref<8x1xf32, #tpu.memory_space<vmem>>, vector<8x1xf32>
    %5 = vector.broadcast %4 : vector<8x1xf32> to vector<8x256xf32>
    %6 = arith.addf %3, %5 : vector<8x256xf32>
    %cst_6 = arith.constant 0.000000e+00 : f32
    %7 = vector.broadcast %cst_6 : f32 to vector<8x256xf32>
    %8 = arith.maximumf %6, %7 : vector<8x256xf32>
    %c0_7 = arith.constant 0 : index
    %c0_8 = arith.constant 0 : index
    %c0_9 = arith.constant 0 : index
    %9 = vector.load %arg5[%c0_7, %c0_8, %c0_9] : memref<1x8x256xf32, #tpu.memory_space<vmem>>, vector<1x8x256xf32>
    %10 = vector.shape_cast %9 : vector<1x8x256xf32> to vector<8x256xf32>
    %11 = vector.shape_cast %8 : vector<8x256xf32> to vector<1x8x256xf32>
    tpu.vector_store %arg5[%c0_7, %c0_8, %c0_9], %11 {strides = array<i32>} : memref<1x8x256xf32, #tpu.memory_space<vmem>>, vector<1x8x256xf32>,
    return
  }
  func.func @transform_0(%arg0: i32, %arg1: i32) -> (i32, i32, i32) {
    %c0_i32 = arith.constant 0 : i32
    %c0_i32_0 = arith.constant 0 : i32
    return %arg0, %c0_i32, %arg1 : i32, i32, i32
  }
  func.func @transform_1(%arg0: i32, %arg1: i32) -> (i32, i32) {
    %c0_i32 = arith.constant 0 : i32
    %c0_i32_0 = arith.constant 0 : i32
    %c0_i32_1 = arith.constant 0 : i32
    return %c0_i32, %c0_i32_0 : i32, i32
  }
  func.func @transform_2(%arg0: i32, %arg1: i32) -> (i32, i32) {
    %c0_i32 = arith.constant 0 : i32
    %c0_i32_0 = arith.constant 0 : i32
    %c0_i32_1 = arith.constant 0 : i32
    return %c0_i32, %c0_i32_0 : i32, i32
  }
  func.func @transform_3(%arg0: i32, %arg1: i32) -> (i32, i32, i32) {
    %c0_i32 = arith.constant 0 : i32
    %c0_i32_0 = arith.constant 0 : i32
    return %arg0, %c0_i32, %arg1 : i32, i32, i32
  }
}

</mosaic_0001>

<bundles_post_ra>
// kernel: reverse.0
= control target key start
LH: loop header
LB: loop body
LE: loop exit
PB: predicated region body
PF: predicated region fallthrough
CT: control target
= control target key end

     0   :  { %v72_v3 = vlaneseq  ;;  %v65_v9 = vld [vmem:[#allocation0 + $0x7] ss:$-1 sm:$0xff]  ;;  %v79_v12 = vld [vmem:[#allocation0 + $0x17] ss:$-1 sm:$0xff]  ;;  %s331_s0 = inlined_call_operand.vmem [shape: f32[2,4,16,7], index: 0, kind: input, shape index: {}]   ;;  %s332_s1 = inlined_call_operand.vmem [shape: f32[2,4,16,7], index: 1, kind: output, shape index: {}]  }
   0x1   :  { %v45_v0 = vld [vmem:[%s331_s0] sm:$0xff]  ;;  %v47_v1 = vld [vmem:[%s331_s0 + $0x8] sm:$0xff]  ;;  %v49_v2 = vld [vmem:[%s331_s0 + $0x10] sm:$0xff]  ;;  %v66_v10 = vrot.slane %v65_v9, 1  ;;  %v80_v14 = vrot.slane %v79_v12, 1 }
   0x2   :  { %46 = vst [vmem:[#allocation0 + $0x8] sm:$0xff] %v45_v0  ;;  %48 = vst [vmem:[#allocation0 + $0x18] sm:$0xff] %v47_v1  ;;  %v51_v4 = vld [vmem:[%s331_s0 + $0x18] sm:$0xff]  ;;  %v53_v5 = vld [vmem:[%s331_s0 + $0x20] sm:$0xff]  ;;  %v73_v11 = vshrl.u32 %v72_v3, 7 }
   0x3   :  { %50 = vst [vmem:[#allocation0 + $0x28] sm:$0xff] %v49_v2  ;;  %v55_v6 = vld [vmem:[%s331_s0 + $0x28] sm:$0xff]  ;;  %52 = vst [vmem:[#allocation0 + $0x38] sm:$0xff] %v51_v4  ;;  %v57_v7 = vld [vmem:[%s331_s0 + $0x30] sm:$0xff] }
   0x4   :  { %54 = vst [vmem:[#allocation0 + $0x48] sm:$0xff] %v53_v5  ;;  %56 = vst [vmem:[#allocation0 + $0x58] sm:$0xff] %v55_v6  ;;  %v59_v8 = vld [vmem:[%s331_s0 + $0x38] sm:$0xff]  ;;  %v93_v13 = vld [vmem:[#allocation0 + $0x27] ss:$-1 sm:$0xff]  ;;  %vm74_vm0 = vcmp.lt.s32.totalorder %v73_v11, 7 }
   0x5   :  { %58 = vst [vmem:[#allocation0 + $0x68] sm:$0xff] %v57_v7  ;;  %60 = vst [vmem:[#allocation0 + $0x78] sm:$0xff] %v59_v8  ;;  %v94_v15 = vrot.slane %v93_v13, 1  ;;  %v107_v16 = vld [vmem:[#allocation0 + $0x37] ss:$-1 sm:$0xff] }
   0x6   :  { %67 = vst [vmem:[#allocation1] sm:$0xff] %v66_v10  ;;  %v108_v17 = vrot.slane %v107_v16, 1  ;;  %v121_v18 = vld [vmem:[#allocation0 + $0x47] ss:$-1 sm:$0xff]  ;;  %v135_v19 = vld [vmem:[#allocation0 + $0x57] ss:$-1 sm:$0xff] }
   0x7   :  { %81 = vst [vmem:[#allocation1 + $0x8] sm:$0xff] %v80_v14  ;;  %95 = vst [vmem:[#allocation1 + $0x10] sm:$0xff] %v94_v15  ;;  %v122_v20 = vrot.slane %v121_v18, 1  ;;  %v136_v21 = vrot.slane %v135_v19, 1  ;;  %v149_v22 = vld [vmem:[#allocation0 + $0x67] ss:$-1 sm:$0xff] }
   0x8   :  { %v163_v23 = vld [vmem:[#allocation0 + $0x77] ss:$-1 sm:$0xff]  ;;  %109 = vst [vmem:[#allocation1 + $0x18] sm:$0xff] %v108_v17  ;;  %v150_v24 = vrot.slane %v149_v22, 1 }
   0x9   :  { %v164_v25 = vrot.slane %v163_v23, 1  ;;  %v70_v26 = vld [vmem:[#allocation0 + $0xf] ss:$-1 sm:$0xff]  ;;  %v84_v27 = vld [vmem:[#allocation0 + $0x1f] ss:$-1 sm:$0xff]  ;;  %123 = vst [vmem:[#allocation1 + $0x20] sm:$0xff] %v122_v20 }
   0xa   :  { %v98_v28 = vld [vmem:[#allocation0 + $0x2f] ss:$-1 sm:$0xff]  ;;  %137 = vst [vmem:[#allocation1 + $0x28] sm:$0xff] %v136_v21  ;;  %v71_v29 = vrot.slane %v70_v26, 1  ;;  %v85_v30 = vrot.slane %v84_v27, 1  ;;  %151 = vst [vmem:[#allocation1 + $0x30] sm:$0xff] %v150_v24 }
   0xb   :  { %v99_v31 = vrot.slane %v98_v28, 1  ;;  %v112_v32 = vld [vmem:[#allocation0 + $0x3f] ss:$-1 sm:$0xff]  ;;  %165 = vst [vmem:[#allocation1 + $0x38] sm:$0xff] %v164_v25  ;;  %v126_v34 = vld [vmem:[#allocation0 + $0x4f] ss:$-1 sm:$0xff] }
   0xc   :  { %v113_v33 = vrot.slane %v112_v32, 1  ;;  %v140_v35 = vld [vmem:[#allocation0 + $0x5f] ss:$-1 sm:$0xff]  ;;  %75 = vst.msk [vmem:[#allocation1] sm:$0xff] %vm74_vm0, %v71_v29  ;;  %89 = vst.msk [vmem:[#allocation1 + $0x8] sm:$0xff] %vm74_vm0, %v85_v30  ;;  %v127_v36 = vrot.slane %v126_v34, 1 }
   0xd   :  { %103 = vst.msk [vmem:[#allocation1 + $0x10] sm:$0xff] %vm74_vm0, %v99_v31  ;;  %v141_v37 = vrot.slane %v140_v35, 1  ;;  %v154_v38 = vld [vmem:[#allocation0 + $0x6f] ss:$-1 sm:$0xff]  ;;  %v168_v39 = vld [vmem:[#allocation0 + $0x7f] ss:$-1 sm:$0xff] }
   0xe   :  { %117 = vst.msk [vmem:[#allocation1 + $0x18] sm:$0xff] %vm74_vm0, %v113_v33  ;;  %v155_v40 = vrot.slane %v154_v38, 1  ;;  %v169_v41 = vrot.slane %v168_v39, 1  ;;  %131 = vst.msk [vmem:[#allocation1 + $0x20] sm:$0xff] %vm74_vm0, %v127_v36 }
   0xf   :  { %145 = vst.msk [vmem:[#allocation1 + $0x28] sm:$0xff] %vm74_vm0, %v141_v37 }
  0x10   :  { %159 = vst.msk [vmem:[#allocation1 + $0x30] sm:$0xff] %vm74_vm0, %v155_v40  ;;  %173 = vst.msk [vmem:[#allocation1 + $0x38] sm:$0xff] %vm74_vm0, %v169_v41 }
  0x13   :  { %v216_v42 = vld [vmem:[#allocation1] sm:$0xff]  ;;  %v218_v43 = vld [vmem:[#allocation1 + $0x8] sm:$0xff] }
  0x14   :  { %v220_v44 = vld [vmem:[#allocation1 + $0x10] sm:$0xff]  ;;  %217 = vst [vmem:[%s332_s1] sm:$0xff] %v216_v42  ;;  %219 = vst [vmem:[%s332_s1 + $0x8] sm:$0xff] %v218_v43 }
  0x15   :  { %221 = vst [vmem:[%s332_s1 + $0x10] sm:$0xff] %v220_v44  ;;  %v222_v45 = vld [vmem:[#allocation1 + $0x18] sm:$0xff]  ;;  %v224_v46 = vld [vmem:[#allocation1 + $0x20] sm:$0xff] }
  0x16   :  { %223 = vst [vmem:[%s332_s1 + $0x18] sm:$0xff] %v222_v45  ;;  %v226_v47 = vld [vmem:[#allocation1 + $0x28] sm:$0xff]  ;;  %225 = vst [vmem:[%s332_s1 + $0x20] sm:$0xff] %v224_v46 }
  0x17   :  { %227 = vst [vmem:[%s332_s1 + $0x28] sm:$0xff] %v226_v47  ;;  %v228_v48 = vld [vmem:[#allocation1 + $0x30] sm:$0xff]  ;;  %v230_v49 = vld [vmem:[#allocation1 + $0x38] sm:$0xff] }
  0x18   :  { %229 = vst [vmem:[%s332_s1 + $0x30] sm:$0xff] %v228_v48  ;;  %231 = vst [vmem:[%s332_s1 + $0x38] sm:$0xff] %v230_v49 }

// kernel: fourier_unit_forward.1
= control target key start
LH: loop header
LB: loop body
LE: loop exit
PB: predicated region body
PF: predicated region fallthrough
CT: control target
= control target key end

     0   :  { %s472_s12 = smov 0   ;;  %s474_s13 = smov 0   ;;  %s511_s0 = inlined_call_operand.vmem [shape: f32[2,8,144], index: 0, kind: input, shape index: {}]   ;;  %s512_s1 = inlined_call_operand.vmem [shape: f32[8,8], index: 1, kind: input, shape index: {}]   ;;  %s513_s2 = inlined_call_operand.vmem [shape: f32[8,1], index: 2, kind: input, shape index: {}]   ;;  %s514_s3 = inlined_call_operand.vmem [shape: f32[2,8,144], index: 3, kind: output, shape index: {}]  }
   0x1   :  { %s476_s14 = smov 0  }
   0x2 LB: > { %s25_s15 = sadd.s32 1, %s444_s13  ;;  %p389_p0 = scmp.ge.s32.totalorder %s448_s14, 1  ;;  %s448_s14 = sphi %s476_s14, %s13_s14   ;;  %s444_s13 = sphi %s474_s13, %s516_s13   ;;  %s440_s12 = sphi %s472_s12, %s515_s12  }
   0x3   : > { %p27_p1 = scmp.ge.s32.totalorder %s25_s15, 2  ;;  %p158_p2 = scmp.lt.s32.totalorder %s448_s14, 3 }
   0x5   : > { %s518_s15 = smov (%p27_p1, %s25_s15), 0  ;;  %p159_p3 = pnand %p389_p0, %p158_p2 }
   0x6   : > { %p191_p4 = scmp.lt.s32.totalorder (!%p159_p3), %s440_s12, 1 }
   0x7   : > { %162 = sbr.rel (%p159_p3) target bundleno = 218 (0xda), region = 32 }
   0xc   : > { %v213_v0 = vld [vmem:[%s513_s2] sm:$0xff]  ;;  %v450_v1 = vmov 0.0   ;;  %v451_v2 = vmov 0   ;;  %s520_s12 = smov (!%p191_p4, %s440_s12), 1  ;;  %vm219_vm0 = vcmask 64512  }
   0xd   : > { %287 = vmatprep.mubr.f32.mxu0 %v450_v1  ;;  %425 = vset.pattern.permute.xlu0 %v451_v2  ;;  %s397_s18 = sshll.u32 %s520_s12, 4  ;;  %v210_v5 = vld [vmem:[%s512_s1] sm:$0xff] }
   0xe   : > { %216 = vperm.xlu0 %425, %v213_v0   ;;  %s198_s21 = scalar_lea.vmem %s511_s0, %s397_s18  ;;  %s208_s26 = scalar_lea.vmem %s514_s3, %s397_s18 }
   0xf   : > { %v212_v3 = vld [vmem:[%s198_s21 + $0x8] sm:$0xff]  ;;  %v211_v4 = vld [vmem:[%s198_s21] sm:$0xff] }
  0x10   : > { %253 = vmatprep.subr.mxu0 %v212_v3 }
  0x11   : > { %254 = vmatpush1.msra.mxu0 %v211_v4 }
  0x12   : > { %394 = vmatmul.mubr.msk.f32.vlgmr.msra.gmra.mxu0 %vm219_vm0, %v210_v5 }
  0x89   : > { %v217_v6 = vpop.permute.xlu0 %216 }
  0xd2   : > { %v289_v7 = vpop.f32.mrf.mxu0 }
  0xd3   : > { %v290_v8 = vadd.f32 %v289_v7, %v217_v6 }
  0xd4   : > { %v291_v9 = vpop.f32.mrf.mxu0 }
  0xd5   : > { %v294_v10 = vmax.f32 %v290_v8, 0.0  ;;  %v292_v11 = vadd.f32 %v291_v9, %v217_v6 }
  0xd7   : > { %296 = vst [vmem:[%s208_s26] sm:$0xff] %v294_v10  ;;  %v295_v12 = vmax.f32 %v292_v11, 0.0 }
  0xd9   : > { %297 = vst [vmem:[%s208_s26 + $0x8] sm:$0xff] %v295_v12 }
  0xda PF: > { %s13_s14 = sadd.s32 1, %s448_s14   ;;  %s515_s12 = smov %s444_s13 }
  0xdb   : > { %p10_p5 = scmp.ge.s32.totalorder %s13_s14, 4   ;;  %s516_s13 = smov %s518_s15 }
  0xdd   :  { %12 = sbr.rel (!%p10_p5) target bundleno = 2 (0x2), region = 62 }

</bundles_post_ra>
